<compile_context>
chip_gen: v7x
topology: tpu7x:2x2x1
jax: 0.10.0
libtpu: 0.0.40
codegen_flags: <defaults>
</compile_context>

<pallas_src>
import jax
import jax.numpy as jnp
from jax.experimental import pallas as pl
from jax.experimental.pallas import tpu as pltpu


def _round_up(x, m):
    return (x + m - 1) // m * m


def _linear_kernel(x_ref, wt_ref, b_ref, o_ref, acc_ref):
    # x_ref: (TM, TK)  wt_ref: (TK, TN)  b_ref: (1, TN)  o_ref/acc_ref: (TM, TN)
    k = pl.program_id(2)

    @pl.when(k == 0)
    def _():
        acc_ref[...] = jnp.zeros_like(acc_ref)

    acc_ref[...] += jnp.dot(x_ref[...], wt_ref[...],
                            preferred_element_type=jnp.float32)

    @pl.when(k == pl.num_programs(2) - 1)
    def _():
        o_ref[...] = (acc_ref[...] + b_ref[...]).astype(o_ref.dtype)


def _vmem_budget_bytes():
    """~75% of physical VMEM: ~96 MiB on v5e/v6e (128 MiB), ~48 MiB on v7x (64 MiB)."""
    try:
        cap = int(pltpu.get_tpu_info().vmem_capacity_bytes)
    except Exception:
        cap = 64 * 2**20          # conservative fallback (v7x per-TensorCore)
    return (cap * 3) // 4


def _pick_tm(B):
    """Largest power-of-two batch tile whose padding waste stays ~<=12.5% of B."""
    b8 = _round_up(B, 8)
    max_waste = max(B // 8, 7)
    for cand in (512, 256, 128, 64, 32, 16, 8):
        if _round_up(b8, cand) - B <= max_waste:
            return cand, _round_up(b8, cand)
    return 8, b8


def _footprint_bytes(tm, tn, tk):
    # double-buffered x, wT, bias, out tiles + f32 accumulator scratch.
    return 4 * (2 * tm * tk + 2 * tk * tn + 2 * tn + 2 * tm * tn + tm * tn)


def linear_forward(x, weight, bias):
    """PyTorch nn.Linear semantics: y = x @ weight.T + bias.

    x:      (B, D_in)     float32
    weight: (D_out, D_in) float32
    bias:   (D_out,)      float32
    returns (B, D_out)    float32
    """
    B, D_in = x.shape
    D_out = weight.shape[0]

    budget = _vmem_budget_bytes()

    # ---- tile sizing --------------------------------------------------------
    D_out_p = _round_up(D_out, 128)          # lane-dense output features
    if D_out_p % 512 == 0:
        tn = 512
    elif D_out_p % 256 == 0:
        tn = 256
    else:
        tn = 128

    tm, B_p = _pick_tm(B)

    if _footprint_bytes(tm, tn, D_in) <= budget:
        tk = D_in                             # hold K whole -> resident operand
        D_in_p = D_in
    else:
        tk = 1024                             # K grid axis for very large D_in
        while _footprint_bytes(tm, tn, tk) > budget:
            if tk > 512:
                tk //= 2
            elif tn > 128:
                tn //= 2
            elif tm > 8:
                tm = max(8, tm // 2)
            elif tk > 128:
                tk //= 2
            else:
                break
        D_in_p = _round_up(D_in, tk)          # zero-pad contraction dim (safe)

    k_tiles = D_in_p // tk
    n_tiles = D_out_p // tn
    m_tiles = B_p // tm

    # ---- pad operands + one-time weight transpose (no per-step vxpose) ------
    x_p = x
    if (B_p, D_in_p) != (B, D_in):
        x_p = jnp.pad(x, ((0, B_p - B), (0, D_in_p - D_in)))
    w_p = weight
    if D_out_p != D_out:
        w_p = jnp.pad(weight, ((0, D_out_p - D_out), (0, 0)))
    wt_p = w_p.T                                              # (D_in, D_out_p)
    if D_in_p != D_in:
        wt_p = jnp.pad(wt_p, ((0, D_in_p - D_in), (0, 0)))
    b_p = bias if D_out_p == D_out else jnp.pad(bias, (0, D_out_p - D_out))
    b_p = b_p.reshape(1, D_out_p)

    # ---- grid nesting: larger operand resident over the inner spatial axis --
    batch_outer = B_p > D_out_p
    if batch_outer:
        grid = (m_tiles, n_tiles, k_tiles)
        x_map = lambda m, n, k: (m, k)        # x tile constant over inner n
        w_map = lambda m, n, k: (k, n)
        b_map = lambda m, n, k: (0, n)
        o_map = lambda m, n, k: (m, n)
    else:
        grid = (n_tiles, m_tiles, k_tiles)
        x_map = lambda n, m, k: (m, k)
        w_map = lambda n, m, k: (k, n)        # weight tile constant over inner m
        b_map = lambda n, m, k: (0, n)
        o_map = lambda n, m, k: (m, n)

    footprint = _footprint_bytes(tm, tn, tk)
    vmem_limit = int(min(budget, max(2 * footprint, 32 * 2**20)))

    # ---- advisory cost estimate (counts re-streamed operand traffic) --------
    if k_tiles == 1:
        x_reads, w_reads = (1, m_tiles) if batch_outer else (n_tiles, 1)
    else:
        x_reads, w_reads = n_tiles, m_tiles
    cost = pl.CostEstimate(
        flops=2 * B_p * D_in_p * D_out_p,
        transcendentals=0,
        bytes_accessed=4 * (x_reads * B_p * D_in_p
                            + w_reads * D_in_p * D_out_p
                            + D_out_p
                            + B_p * D_out_p),
    )

    out_p = pl.pallas_call(
        _linear_kernel,
        out_shape=jax.ShapeDtypeStruct((B_p, D_out_p), x.dtype),
        grid_spec=pltpu.PrefetchScalarGridSpec(
            num_scalar_prefetch=0,
            grid=grid,
            in_specs=[
                pl.BlockSpec((tm, tk), x_map),      # x
                pl.BlockSpec((tk, tn), w_map),      # weight, pre-transposed
                pl.BlockSpec((1, tn), b_map),       # bias
            ],
            out_specs=pl.BlockSpec((tm, tn), o_map),
            scratch_shapes=[pltpu.VMEM((tm, tn), jnp.float32)],
        ),
        compiler_params=pltpu.CompilerParams(
            dimension_semantics=("parallel", "parallel", "arbitrary"),
            vmem_limit_bytes=vmem_limit,
        ),
        cost_estimate=cost,
    )(x_p, wt_p, b_p)

    # Strip padding back to the logical output shape.
    return out_p[:B, :D_out]


if __name__ == "__main__":
    # Small shapes consistent with LinearRegression(input_dim, output_dim).
    batch, input_dim, output_dim = 8, 32, 16

    key = jax.random.PRNGKey(0)
    kx, kw, kb = jax.random.split(key, 3)

    x = jax.random.normal(kx, (batch, input_dim), dtype=jnp.float32)
    # Mimic nn.Linear's uniform(-1/sqrt(fan_in), 1/sqrt(fan_in)) init.
    bound = 1.0 / (input_dim ** 0.5)
    weight = jax.random.uniform(kw, (output_dim, input_dim),
                                dtype=jnp.float32, minval=-bound, maxval=bound)
    bias = jax.random.uniform(kb, (output_dim,),
                              dtype=jnp.float32, minval=-bound, maxval=bound)

    y = linear_forward(x, weight, bias)
    jax.block_until_ready(y)

    # Reference check against plain JAX (PyTorch nn.Linear semantics).
    y_ref = x @ weight.T + bias
    assert y.shape == (batch, output_dim)
    assert jnp.allclose(y, y_ref, atol=1e-5, rtol=1e-5)

    print("KERNEL_OK")
</pallas_src>

<mosaic_0001>
module attributes {stable_mosaic.version = 11 : i64} {
  func.func @_linear_kernel(%arg0: i32, %arg1: i32, %arg2: i32, %arg3: memref<8x32xf32, #tpu.memory_space<vmem>>, %arg4: memref<32x128xf32, #tpu.memory_space<vmem>>, %arg5: memref<1x128xf32, #tpu.memory_space<vmem>>, %arg6: memref<8x128xf32, #tpu.memory_space<vmem>>, %arg7: memref<8x128xf32, #tpu.memory_space<vmem>>) attributes {dimension_semantics = [#tpu.dimension_semantics<parallel>, #tpu.dimension_semantics<parallel>, #tpu.dimension_semantics<arbitrary>], iteration_bounds = array<i64: 1, 1, 1>, scalar_prefetch = 0 : i64, scratch_operands = 1 : i64, tpu.core_type = #tpu.core_type<tc>, window_params = [{transform_indices = @transform_0, window_bounds = array<i64: 8, 32>}, {transform_indices = @transform_1, window_bounds = array<i64: 32, 128>}, {transform_indices = @transform_2, window_bounds = array<i64: 1, 128>}, {transform_indices = @transform_3, window_bounds = array<i64: 8, 128>}]} {
    %c0_i32 = arith.constant 0 : i32
    %0 = arith.cmpi eq, %arg2, %c0_i32 : i32
    %1 = arith.extui %0 : i1 to i32
    %c0_i32_0 = arith.constant 0 : i32
    %2 = arith.cmpi ne, %1, %c0_i32_0 : i32
    scf.if %2 {
      %cst_10 = arith.constant 0.000000e+00 : f32
      %12 = vector.broadcast %cst_10 : f32 to vector<8x128xf32>
      %c0_11 = arith.constant 0 : index
      %c0_12 = arith.constant 0 : index
      %13 = vector.load %arg7[%c0_11, %c0_12] : memref<8x128xf32, #tpu.memory_space<vmem>>, vector<8x128xf32>
      tpu.vector_store %arg7[%c0_11, %c0_12], %12 {strides = array<i32>} : memref<8x128xf32, #tpu.memory_space<vmem>>, vector<8x128xf32>,
    } else {
    }
    %c0 = arith.constant 0 : index
    %c0_1 = arith.constant 0 : index
    %3 = vector.load %arg7[%c0, %c0_1] : memref<8x128xf32, #tpu.memory_space<vmem>>, vector<8x128xf32>
    %c0_2 = arith.constant 0 : index
    %c0_3 = arith.constant 0 : index
    %4 = vector.load %arg3[%c0_2, %c0_3] : memref<8x32xf32, #tpu.memory_space<vmem>>, vector<8x32xf32>
    %c0_4 = arith.constant 0 : index
    %c0_5 = arith.constant 0 : index
    %5 = vector.load %arg4[%c0_4, %c0_5] : memref<32x128xf32, #tpu.memory_space<vmem>>, vector<32x128xf32>
    %cst = arith.constant dense<0.000000e+00> : vector<8x128xf32>
    %6 = tpu.matmul %4, %5, %cst {dimension_numbers = #tpu.dot_dimension_numbers<[1], [0], [0], [1], [0, 0, 1, 1], [], []>} : vector<8x32xf32>, vector<32x128xf32>, vector<8x128xf32> -> vector<8x128xf32>
    %7 = arith.addf %3, %6 : vector<8x128xf32>
    %c0_6 = arith.constant 0 : index
    %c0_7 = arith.constant 0 : index
    %8 = vector.load %arg7[%c0_6, %c0_7] : memref<8x128xf32, #tpu.memory_space<vmem>>, vector<8x128xf32>
    tpu.vector_store %arg7[%c0_6, %c0_7], %7 {strides = array<i32>} : memref<8x128xf32, #tpu.memory_space<vmem>>, vector<8x128xf32>,
    %c0_i32_8 = arith.constant 0 : i32
    %9 = arith.cmpi eq, %arg2, %c0_i32_8 : i32
    %10 = arith.extui %9 : i1 to i32
    %c0_i32_9 = arith.constant 0 : i32
    %11 = arith.cmpi ne, %10, %c0_i32_9 : i32
    scf.if %11 {
      %c0_10 = arith.constant 0 : index
      %c0_11 = arith.constant 0 : index
      %12 = vector.load %arg7[%c0_10, %c0_11] : memref<8x128xf32, #tpu.memory_space<vmem>>, vector<8x128xf32>
      %c0_12 = arith.constant 0 : index
      %c0_13 = arith.constant 0 : index
      %13 = vector.load %arg5[%c0_12, %c0_13] : memref<1x128xf32, #tpu.memory_space<vmem>>, vector<1x128xf32>
      %14 = vector.broadcast %13 : vector<1x128xf32> to vector<8x128xf32>
      %15 = arith.addf %12, %14 : vector<8x128xf32>
      %c0_14 = arith.constant 0 : index
      %c0_15 = arith.constant 0 : index
      %16 = vector.load %arg6[%c0_14, %c0_15] : memref<8x128xf32, #tpu.memory_space<vmem>>, vector<8x128xf32>
      tpu.vector_store %arg6[%c0_14, %c0_15], %15 {strides = array<i32>} : memref<8x128xf32, #tpu.memory_space<vmem>>, vector<8x128xf32>,
    } else {
    }
    return
  }
  func.func @transform_0(%arg0: i32, %arg1: i32, %arg2: i32) -> (i32, i32) {
    %c0_i32 = arith.constant 0 : i32
    return %arg1, %arg2 : i32, i32
  }
  func.func @transform_1(%arg0: i32, %arg1: i32, %arg2: i32) -> (i32, i32) {
    %c0_i32 = arith.constant 0 : i32
    return %arg2, %arg0 : i32, i32
  }
  func.func @transform_2(%arg0: i32, %arg1: i32, %arg2: i32) -> (i32, i32) {
    %c0_i32 = arith.constant 0 : i32
    %c0_i32_0 = arith.constant 0 : i32
    return %c0_i32, %arg0 : i32, i32
  }
  func.func @transform_3(%arg0: i32, %arg1: i32, %arg2: i32) -> (i32, i32) {
    %c0_i32 = arith.constant 0 : i32
    return %arg1, %arg0 : i32, i32
  }
}

</mosaic_0001>

<bundles_post_ra>
// kernel: tpu_custom_call.1
= control target key start
LH: loop header
LB: loop body
LE: loop exit
PB: predicated region body
PF: predicated region fallthrough
CT: control target
= control target key end

     0   :  { %8 = vsyncpa [#allocation4], 0  ;;  %s335_s0 = inlined_call_operand.hbm [shape: f32[8,32], index: 0, kind: input, shape index: {}]   ;;  %s336_s1 = inlined_call_operand.hbm [shape: f32[32,128], index: 1, kind: input, shape index: {}]   ;;  %s337_s2 = inlined_call_operand.vmem [shape: f32[1,128], index: 2, kind: input, shape index: {}]   ;;  %s338_s3 = inlined_call_operand.hbm [shape: f32[8,128], index: 3, kind: output, shape index: {}]  }
   0x1   :  { %9 = vsyncpa [#allocation7], 0 }
   0x2   :  { %10 = vsyncpa [#allocation5], 0  ;;  %s261_s12 = smov [#allocation3]   ;;  %s262_s14 = smov [#allocation6]  }
   0x3   :  { %s17_s13 = sshll.u32 %s261_s12, 4  ;;  %s26_s15 = sshll.u32 %s262_s14, 4  ;;  %s18_s13 = int_to_ptr.vmem [resolvable:$true] %s17_s13  ;;  %s289_s15 = int_to_ptr.vmem [resolvable:$true] %s26_s15 }
   0x4   :  { %s189_s18 = scalar_lea.hbm %s335_s0, 128 }
   0x5   :  { %p190_p0 = scmp.ne.s32.totalorder %s335_s0, %s189_s18  ;;  %p193_p1 = scmp.lt.u32.totalorder %s189_s18, %s335_s0 }
   0x7   :  { %p195_p2 = pnand %p193_p1, %p190_p0 }
   0x9   :  { %198 = shalt.err (!%p195_p2)
}
   0xa   :  { %s199_s23 = scalar_lea.vmem %s18_s13, 128  ;;  %p204_p4 = scmp.lt.s32.totalorder %s18_s13, %s18_s13 }
   0xb   :  { %p200_p3 = scmp.ne.s32.totalorder %s18_s13, %s199_s23  ;;  %p205_p5 = scmp.lt.s32.totalorder %s199_s23, %s199_s23 }
   0xd   :  { %p206_p6 = por %p205_p5, %p204_p4 }
   0xf   :  { %p207_p7 = pnand %p206_p6, %p200_p3 }
  0x11   :  { %210 = shalt.err (!%p207_p7)
}
  0x12   :  { %20 = dma.hbm_to_vmem [thread:$0]  %s335_s0, 128, %s18_s13, [#allocation4]  }
  0x13   :  { %s211_s28 = scalar_lea.hbm %s336_s1, 512 }
  0x14   :  { %p212_p8 = scmp.ne.s32.totalorder %s336_s1, %s211_s28  ;;  %p215_p9 = scmp.lt.u32.totalorder %s211_s28, %s336_s1 }
  0x16   :  { %p217_p10 = pnand %p215_p9, %p212_p8 }
  0x18   :  { %220 = shalt.err (!%p217_p10)
}
  0x19   :  { %s221_s6 = scalar_lea.vmem %s289_s15, 512  ;;  %p226_p12 = scmp.lt.s32.totalorder %s289_s15, %s289_s15 }
  0x1a   :  { %p222_p11 = scmp.ne.s32.totalorder %s289_s15, %s221_s6  ;;  %p227_p13 = scmp.lt.s32.totalorder %s221_s6, %s221_s6 }
  0x1c   :  { %p228_p0 = por %p227_p13, %p226_p12 }
  0x1e   :  { %p229_p1 = pnand %p228_p0, %p222_p11 }
  0x20   :  { %232 = shalt.err (!%p229_p1)
}
  0x21   :  { %s263_s0 = smov 128   ;;  %s264_s7 = smov 8  }
  0x22   :  { %32 = dma.hbm_to_vmem [thread:$0]  %s336_s1, 512, %s289_s15, [#allocation7], %s263_s0, %s263_s0, %s264_s7  }
  0x23   :  { %255 = dma.done.wait [#allocation4], 128  }
  0x24   :  { %256 = vsyncadd [#allocation4], 4294967168 }
  0x25   :  { %257 = dma.done.wait [#allocation7], 512  }
  0x26   :  { %258 = vsyncadd [#allocation7], 4294966784  ;;  %v265_v0 = vmov 0.0|0.0   ;;  %vm266_vm0 = vmmov 0   ;;  %v267_v1 = vmov 0.0   ;;  %v48_v2 = vld [vmem:[#allocation6] sm:$0xff] }
  0x27   :  { %175 = vmatprep.subr.bf16.mxu0 %v265_v0  ;;  %172 = vmatprep.mubr.msk.f32.mxu0 %vm266_vm0, %v267_v1  ;;  %v49_v3 = vld [vmem:[#allocation6 + $0x8] sm:$0xff]  ;;  %v50_v4 = vld [vmem:[#allocation6 + $0x10] sm:$0xff]  ;;  %v51_v6 = vld [vmem:[#allocation6 + $0x18] sm:$0xff]  ;;  %vm52_vm1 = vcmask 261120   ;;  %s268_s11 = smov [#allocation8]  }
  0x28   :  { %v176_v5 = vpack.c.bf16 %v49_v3, %v48_v2  ;;  %v179_v7 = vpack.c.bf16 %v51_v6, %v50_v4  ;;  %v47_v8 = vld [vmem:[#allocation3] sm:$0xff]  ;;  %s147_s12 = sshll.u32 %s268_s11, 4  ;;  %s148_s12 = int_to_ptr.vmem [resolvable:$true] %s147_s12 }
  0x29   :  { %v158_v9 = vld [vmem:[%s337_s2] ss:$0 sm:$0xff]  ;;  %s233_s13 = scalar_lea.vmem %s148_s12, 128  ;;  %p238_p3 = scmp.lt.s32.totalorder %s148_s12, %s148_s12 }
  0x2a   :  { %177 = vmatpush3.bf16.msra.mxu0 %v176_v5  ;;  %p234_p2 = scmp.ne.s32.totalorder %s148_s12, %s233_s13  ;;  %p239_p4 = scmp.lt.s32.totalorder %s233_s13, %s233_s13 }
  0x2b   :  { %178 = vmatprep.subr.bf16.mxu0 %v265_v0 }
  0x2c   :  { %p240_p5 = por %p239_p4, %p238_p3 }
  0x2e   :  { %180 = vmatpush3.bf16.msra.mxu0 %v179_v7  ;;  %p241_p6 = pnand %p240_p5, %p234_p2 }
  0x31   :  { %173 = vmatmul.mubr.msk.f32.vlgmr.msra.gmra.mrb[0].mxu0 %vm52_vm1, %v47_v8 }
 0x104   :  { %v122_v10 = vpop.f32.mrb[0].mxu0 }
 0x105   :  { %v139_v11 = vadd.f32 %v158_v9, %v122_v10  ;;  %v174_v12 = vpop.f32.mrb[1].mxu0 }
 0x107   :  { %140 = vst [vmem:[#allocation8] sm:$0xff] %v139_v11 }
 0x108   :  { %244 = shalt.err (!%p241_p6)
}
 0x109   :  { %s245_s16 = scalar_lea.hbm %s338_s3, 128 }
 0x10a   :  { %p246_p7 = scmp.ne.s32.totalorder %s338_s3, %s245_s16  ;;  %p249_p8 = scmp.lt.u32.totalorder %s245_s16, %s338_s3 }
 0x10c   :  { %p251_p9 = pnand %p249_p8, %p246_p7 }
 0x10e   :  { %254 = shalt.err (!%p251_p9)
}
 0x10f   :  { %150 = dma.vmem_to_hbm [thread:$0]  %s148_s12, 128, %s338_s3, [#allocation5]  }
 0x110   :  { %259 = dma.done.wait [#allocation5], 128  }
 0x111   :  { %260 = vsyncadd [#allocation5], 4294967168 }
 0x112   :  { %154 = vsyncpa [#allocation4], 1 }
 0x113   :  { %155 = vsyncpa [#allocation7], 1 }
 0x114   :  { %156 = vsyncpa [#allocation5], 1 }

</bundles_post_ra>
